<compile_context>
chip_gen: v7x
topology: tpu7x:2x2x1
jax: 0.10.0
libtpu: 0.0.40
codegen_flags: <defaults>
</compile_context>

<pallas_src>
import functools

import jax
import jax.numpy as jnp
from jax import lax
from jax.experimental import pallas as pl
from jax.experimental.pallas import tpu as pltpu


def _round_up(x: int, m: int) -> int:
    return ((x + m - 1) // m) * m


def _make_kernel(compute_dtype):
    def kernel(obs_ref, tw1_ref, b1_ref, w2_ref, b2_ref, w3_ref, b3_ref, out_ref):
        obs = obs_ref[...]                                  # [TB, F] int32
        tb, F = obs.shape
        E = tw1_ref.shape[0]                                # padded vocab (lane-dense)

        # --- EmbeddingPool fused with Linear1: counts @ (table @ w1) ---
        # counts accumulated directly in compute_dtype (small exact integers <= F).
        e_iota = lax.broadcasted_iota(jnp.int32, (tb, E), 1)
        counts = jnp.zeros((tb, E), compute_dtype)
        for f in range(F):                                  # F is tiny & static
            counts = counts + (obs[:, f:f + 1] == e_iota).astype(compute_dtype)

        h1 = jnp.dot(counts, tw1_ref[...],
                     preferred_element_type=jnp.float32) + b1_ref[...]
        h1 = jnp.maximum(h1, 0.0)                           # padded lanes stay 0

        h2 = jnp.dot(h1.astype(compute_dtype), w2_ref[...],
                     preferred_element_type=jnp.float32) + b2_ref[...]
        h2 = jnp.maximum(h2, 0.0)

        # 1/temperature already folded into w3/b3; padded action lanes carry -1e30 bias.
        logits = jnp.dot(h2.astype(compute_dtype), w3_ref[...],
                         preferred_element_type=jnp.float32) + b3_ref[...]

        # --- Categorical(logits=...) normalization (log_softmax), f32 math ---
        m = jnp.max(logits, axis=-1, keepdims=True)
        z = logits - m
        lse = jnp.log(jnp.sum(jnp.exp(z), axis=-1, keepdims=True))
        out_ref[...] = (z - lse).astype(out_ref.dtype)      # normalized log-probs (bf16)

    return kernel


@functools.partial(jax.jit, static_argnames=("block_b", "compute_dtype"))
def cat_obs_actor_forward(obs, params, temperature=1.0, *, block_b=512,
                          compute_dtype=jnp.bfloat16):
    """Returns the Categorical distribution's normalized log-probs, shape [B, num_actions]."""
    table, w1, b1, w2, b2, w3, b3 = params
    B, F = obs.shape
    E, D = table.shape
    H1 = w1.shape[1]
    H2 = w2.shape[1]
    A = w3.shape[1]
    assert F <= 256, "bf16 count accumulation is exact only for F <= 256"

    LANE = 128
    E_pad = _round_up(max(E, 1), LANE)
    H1_pad = _round_up(max(H1, 1), LANE)
    H2_pad = _round_up(max(H2, 1), LANE)
    A_pad = _round_up(max(A, 1), LANE)

    # temperature is traced -> annealing it never recompiles.
    inv_temp = jnp.float32(1.0) / jnp.asarray(temperature, jnp.float32)
    NEG = jnp.float32(-1e30)

    # Fuse embedding table into the first Linear (exact: sum-pool and Linear are linear).
    tw1 = jnp.dot(table, w1, preferred_element_type=jnp.float32)          # [E, H1] f32
    tw1p = jnp.zeros((E_pad, H1_pad), jnp.float32).at[:E, :H1].set(tw1)
    b1p = jnp.zeros((H1_pad,), jnp.float32).at[:H1].set(b1)
    w2p = jnp.zeros((H1_pad, H2_pad), jnp.float32).at[:H1, :H2].set(w2)
    b2p = jnp.zeros((H2_pad,), jnp.float32).at[:H2].set(b2)
    # Fold temperature into the last layer; padded action lanes get -1e30 bias so they
    # never influence the softmax.
    w3p = jnp.zeros((H2_pad, A_pad), jnp.float32).at[:H2, :A].set(w3 * inv_temp)
    b3p = jnp.full((A_pad,), NEG, jnp.float32).at[:A].set(b3 * inv_temp)

    cdt = compute_dtype
    tw1_c = tw1p.astype(cdt)
    w2_c = w2p.astype(cdt)
    w3_c = w3p.astype(cdt)

    # Batch tiling: TB multiple of 8, padded batch multiple of TB (pad index = 0, valid).
    tb = min(int(block_b), _round_up(B, 8))
    tb = _round_up(tb, 8)
    B_pad = _round_up(B, tb)
    obs = obs.astype(jnp.int32)
    if B_pad != B:
        obs = jnp.pad(obs, ((0, B_pad - B), (0, 0)))
    grid = (B_pad // tb,)

    # VMEM budget: single-buffered resident weights + double-buffered obs/out tiles
    # + in-kernel activations, ~25% headroom; capped for v7x (64 MiB physical per TC).
    bytes_w = (E_pad * H1_pad + H1_pad * H2_pad + H2_pad * A_pad) * 2     # bf16
    bytes_b = (H1_pad + H2_pad + A_pad) * 4                               # f32
    bytes_io = 2 * (tb * F * 4 + tb * A_pad * 2)                          # obs + out, 2x buf
    bytes_act = tb * (E_pad + H1_pad + H2_pad + A_pad) * 4                # f32 activations
    vmem_limit = int(1.25 * (bytes_w + bytes_b + bytes_io + bytes_act)) + (2 << 20)
    vmem_limit = max(vmem_limit, 16 << 20)
    vmem_limit = min(vmem_limit, 56 << 20)

    # Weights/biases never change across the grid -> single buffer (no double-buffer copy).
    resident = dict(pipeline_mode=pl.Buffered(1))

    out = pl.pallas_call(
        _make_kernel(cdt),
        out_shape=jax.ShapeDtypeStruct((B_pad, A_pad), jnp.bfloat16),
        grid=grid,
        in_specs=[
            pl.BlockSpec((tb, F), lambda i: (i, 0)),                      # obs tile
            pl.BlockSpec((E_pad, H1_pad), lambda i: (0, 0), **resident),  # table@w1 fused
            pl.BlockSpec((1, H1_pad), lambda i: (0, 0), **resident),      # b1
            pl.BlockSpec((H1_pad, H2_pad), lambda i: (0, 0), **resident), # w2
            pl.BlockSpec((1, H2_pad), lambda i: (0, 0), **resident),      # b2
            pl.BlockSpec((H2_pad, A_pad), lambda i: (0, 0), **resident),  # w3 (temp-folded)
            pl.BlockSpec((1, A_pad), lambda i: (0, 0), **resident),       # b3 (temp-folded)
        ],
        out_specs=pl.BlockSpec((tb, A_pad), lambda i: (i, 0)),
        compiler_params=pltpu.CompilerParams(
            dimension_semantics=("parallel",),
            vmem_limit_bytes=vmem_limit),
    )(obs, tw1_c, b1p[None, :], w2_c, b2p[None, :], w3_c, b3p[None, :])

    return out[:B, :A]


def init_params(key, num_embeddings, embed_dim, actor_layers, num_actions):
    ks = jax.random.split(key, 7)
    table = jax.random.normal(ks[0], (num_embeddings, embed_dim), jnp.float32) * 0.1
    h1, h2 = actor_layers
    w1 = jax.random.normal(ks[1], (embed_dim, h1), jnp.float32) * (1.0 / jnp.sqrt(embed_dim))
    b1 = jnp.zeros((h1,), jnp.float32)
    w2 = jax.random.normal(ks[2], (h1, h2), jnp.float32) * (1.0 / jnp.sqrt(h1))
    b2 = jnp.zeros((h2,), jnp.float32)
    w3 = jax.random.normal(ks[3], (h2, num_actions), jnp.float32) * (1.0 / jnp.sqrt(h2))
    b3 = jnp.zeros((num_actions,), jnp.float32)
    return table, w1, b1, w2, b2, w3, b3


def _reference(obs, params, temperature=1.0, compute_dtype=jnp.bfloat16):
    """Pure-JAX reference: gather+sum-pool embedding (expressed via exact one-hot counts,
    mathematically identical) -> MLP -> log_softmax, mirroring the kernel's
    bf16-operand / f32-accumulate matmuls and the table@w1 fusion."""
    table, w1, b1, w2, b2, w3, b3 = params
    cdt = compute_dtype

    def bdot(a, b):
        return jnp.dot(a.astype(cdt), b.astype(cdt), preferred_element_type=jnp.float32)

    E = table.shape[0]
    counts = jax.nn.one_hot(obs, E, dtype=jnp.float32).sum(axis=1)     # [B, E]
    tw1 = jnp.dot(table, w1, preferred_element_type=jnp.float32)       # fused, exact
    h1 = jax.nn.relu(bdot(counts, tw1) + b1)
    h2 = jax.nn.relu(bdot(h1, w2) + b2)
    inv_t = 1.0 / temperature
    logits = bdot(h2, w3 * inv_t) + b3 * inv_t
    return jax.nn.log_softmax(logits, axis=-1)


if __name__ == "__main__":
    # Small, module-consistent shapes.
    B = 8                 # batch
    F = 4                 # number of categorical features per observation
    num_embeddings = 32
    embed_dim = 16        # config.categorical_embed_dim
    actor_layers = (32, 32)
    num_actions = 6

    key = jax.random.PRNGKey(0)
    k_obs, k_par = jax.random.split(key)
    obs = jax.random.randint(k_obs, (B, F), 0, num_embeddings, dtype=jnp.int32)
    params = init_params(k_par, num_embeddings, embed_dim, actor_layers, num_actions)

    out = cat_obs_actor_forward(obs, params, temperature=1.0)
    out = jax.block_until_ready(out)

    ref = _reference(obs, params, temperature=1.0)
    assert out.shape == (B, num_actions)
    # Kernel output is bf16 (smaller HBM writeback) -> looser tolerance vs f32 reference.
    assert jnp.allclose(out.astype(jnp.float32), ref, atol=3e-2, rtol=3e-2), \
        "mismatch vs pure-JAX reference"
    print("KERNEL_OK")
</pallas_src>

<mosaic_0001>
module attributes {stable_mosaic.version = 11 : i64} {
  func.func @kernel(%arg0: i32, %arg1: memref<8x4xi32, #tpu.memory_space<vmem>>, %arg2: memref<128x128xbf16, #tpu.memory_space<vmem>>, %arg3: memref<1x128xf32, #tpu.memory_space<vmem>>, %arg4: memref<128x128xbf16, #tpu.memory_space<vmem>>, %arg5: memref<1x128xf32, #tpu.memory_space<vmem>>, %arg6: memref<128x128xbf16, #tpu.memory_space<vmem>>, %arg7: memref<1x128xf32, #tpu.memory_space<vmem>>, %arg8: memref<8x128xbf16, #tpu.memory_space<vmem>>) attributes {dimension_semantics = [#tpu.dimension_semantics<parallel>], iteration_bounds = array<i64: 1>, scalar_prefetch = 0 : i64, scratch_operands = 0 : i64, tpu.core_type = #tpu.core_type<tc>, window_params = [{transform_indices = @transform_0, window_bounds = array<i64: 8, 4>}, {pipeline_mode = #tpu.pipeline_mode<synchronous>, transform_indices = @transform_1, window_bounds = array<i64: 128, 128>}, {pipeline_mode = #tpu.pipeline_mode<synchronous>, transform_indices = @transform_2, window_bounds = array<i64: 1, 128>}, {pipeline_mode = #tpu.pipeline_mode<synchronous>, transform_indices = @transform_3, window_bounds = array<i64: 128, 128>}, {pipeline_mode = #tpu.pipeline_mode<synchronous>, transform_indices = @transform_4, window_bounds = array<i64: 1, 128>}, {pipeline_mode = #tpu.pipeline_mode<synchronous>, transform_indices = @transform_5, window_bounds = array<i64: 128, 128>}, {pipeline_mode = #tpu.pipeline_mode<synchronous>, transform_indices = @transform_6, window_bounds = array<i64: 1, 128>}, {transform_indices = @transform_7, window_bounds = array<i64: 8, 128>}]} {
    %c0 = arith.constant 0 : index
    %c0_0 = arith.constant 0 : index
    %0 = vector.load %arg1[%c0, %c0_0] : memref<8x4xi32, #tpu.memory_space<vmem>>, vector<8x4xi32>
    %1 = tpu.iota {dimensions = array<i32: 1>} : vector<8x128xi32>
    %cst = arith.constant 0.000000e+00 : bf16
    %2 = vector.broadcast %cst : bf16 to vector<8x128xbf16>
    %3 = vector.extract_strided_slice %0 {offsets = [0, 0], sizes = [8, 1], strides = [1, 1]} : vector<8x4xi32> to vector<8x1xi32>
    %4 = vector.broadcast %3 : vector<8x1xi32> to vector<8x128xi32>
    %5 = arith.cmpi eq, %4, %1 : vector<8x128xi32>
    %6 = arith.extui %5 : vector<8x128xi1> to vector<8x128xi32>
    %7 = arith.sitofp %6 : vector<8x128xi32> to vector<8x128xf32>
    %8 = arith.truncf %7 : vector<8x128xf32> to vector<8x128xbf16>
    %9 = arith.addf %2, %8 : vector<8x128xbf16>
    %10 = vector.extract_strided_slice %0 {offsets = [0, 1], sizes = [8, 1], strides = [1, 1]} : vector<8x4xi32> to vector<8x1xi32>
    %11 = vector.broadcast %10 : vector<8x1xi32> to vector<8x128xi32>
    %12 = arith.cmpi eq, %11, %1 : vector<8x128xi32>
    %13 = arith.extui %12 : vector<8x128xi1> to vector<8x128xi32>
    %14 = arith.sitofp %13 : vector<8x128xi32> to vector<8x128xf32>
    %15 = arith.truncf %14 : vector<8x128xf32> to vector<8x128xbf16>
    %16 = arith.addf %9, %15 : vector<8x128xbf16>
    %17 = vector.extract_strided_slice %0 {offsets = [0, 2], sizes = [8, 1], strides = [1, 1]} : vector<8x4xi32> to vector<8x1xi32>
    %18 = vector.broadcast %17 : vector<8x1xi32> to vector<8x128xi32>
    %19 = arith.cmpi eq, %18, %1 : vector<8x128xi32>
    %20 = arith.extui %19 : vector<8x128xi1> to vector<8x128xi32>
    %21 = arith.sitofp %20 : vector<8x128xi32> to vector<8x128xf32>
    %22 = arith.truncf %21 : vector<8x128xf32> to vector<8x128xbf16>
    %23 = arith.addf %16, %22 : vector<8x128xbf16>
    %24 = vector.extract_strided_slice %0 {offsets = [0, 3], sizes = [8, 1], strides = [1, 1]} : vector<8x4xi32> to vector<8x1xi32>
    %25 = vector.broadcast %24 : vector<8x1xi32> to vector<8x128xi32>
    %26 = arith.cmpi eq, %25, %1 : vector<8x128xi32>
    %27 = arith.extui %26 : vector<8x128xi1> to vector<8x128xi32>
    %28 = arith.sitofp %27 : vector<8x128xi32> to vector<8x128xf32>
    %29 = arith.truncf %28 : vector<8x128xf32> to vector<8x128xbf16>
    %30 = arith.addf %23, %29 : vector<8x128xbf16>
    %c0_1 = arith.constant 0 : index
    %c0_2 = arith.constant 0 : index
    %31 = vector.load %arg2[%c0_1, %c0_2] : memref<128x128xbf16, #tpu.memory_space<vmem>>, vector<128x128xbf16>
    %cst_3 = arith.constant dense<0.000000e+00> : vector<8x128xf32>
    %32 = tpu.matmul %30, %31, %cst_3 {dimension_numbers = #tpu.dot_dimension_numbers<[1], [0], [0], [1], [0, 0, 1, 1], [], []>} : vector<8x128xbf16>, vector<128x128xbf16>, vector<8x128xf32> -> vector<8x128xf32>
    %c0_4 = arith.constant 0 : index
    %c0_5 = arith.constant 0 : index
    %33 = vector.load %arg3[%c0_4, %c0_5] : memref<1x128xf32, #tpu.memory_space<vmem>>, vector<1x128xf32>
    %34 = vector.broadcast %33 : vector<1x128xf32> to vector<8x128xf32>
    %35 = arith.addf %32, %34 : vector<8x128xf32>
    %cst_6 = arith.constant 0.000000e+00 : f32
    %36 = vector.broadcast %cst_6 : f32 to vector<8x128xf32>
    %37 = arith.maximumf %35, %36 : vector<8x128xf32>
    %38 = arith.truncf %37 : vector<8x128xf32> to vector<8x128xbf16>
    %c0_7 = arith.constant 0 : index
    %c0_8 = arith.constant 0 : index
    %39 = vector.load %arg4[%c0_7, %c0_8] : memref<128x128xbf16, #tpu.memory_space<vmem>>, vector<128x128xbf16>
    %cst_9 = arith.constant dense<0.000000e+00> : vector<8x128xf32>
    %40 = tpu.matmul %38, %39, %cst_9 {dimension_numbers = #tpu.dot_dimension_numbers<[1], [0], [0], [1], [0, 0, 1, 1], [], []>} : vector<8x128xbf16>, vector<128x128xbf16>, vector<8x128xf32> -> vector<8x128xf32>
    %c0_10 = arith.constant 0 : index
    %c0_11 = arith.constant 0 : index
    %41 = vector.load %arg5[%c0_10, %c0_11] : memref<1x128xf32, #tpu.memory_space<vmem>>, vector<1x128xf32>
    %42 = vector.broadcast %41 : vector<1x128xf32> to vector<8x128xf32>
    %43 = arith.addf %40, %42 : vector<8x128xf32>
    %cst_12 = arith.constant 0.000000e+00 : f32
    %44 = vector.broadcast %cst_12 : f32 to vector<8x128xf32>
    %45 = arith.maximumf %43, %44 : vector<8x128xf32>
    %46 = arith.truncf %45 : vector<8x128xf32> to vector<8x128xbf16>
    %c0_13 = arith.constant 0 : index
    %c0_14 = arith.constant 0 : index
    %47 = vector.load %arg6[%c0_13, %c0_14] : memref<128x128xbf16, #tpu.memory_space<vmem>>, vector<128x128xbf16>
    %cst_15 = arith.constant dense<0.000000e+00> : vector<8x128xf32>
    %48 = tpu.matmul %46, %47, %cst_15 {dimension_numbers = #tpu.dot_dimension_numbers<[1], [0], [0], [1], [0, 0, 1, 1], [], []>} : vector<8x128xbf16>, vector<128x128xbf16>, vector<8x128xf32> -> vector<8x128xf32>
    %c0_16 = arith.constant 0 : index
    %c0_17 = arith.constant 0 : index
    %49 = vector.load %arg7[%c0_16, %c0_17] : memref<1x128xf32, #tpu.memory_space<vmem>>, vector<1x128xf32>
    %50 = vector.broadcast %49 : vector<1x128xf32> to vector<8x128xf32>
    %51 = arith.addf %48, %50 : vector<8x128xf32>
    %cst_18 = arith.constant dense<0xFF800000> : vector<8xf32>
    %52 = vector.multi_reduction <maximumf>, %51, %cst_18 [1] : vector<8x128xf32> to vector<8xf32>
    %53 = vector.shape_cast %52 : vector<8xf32> to vector<8x1xf32>
    %54 = vector.broadcast %53 : vector<8x1xf32> to vector<8x128xf32>
    %55 = arith.subf %51, %54 : vector<8x128xf32>
    %56 = math.exp %55 : vector<8x128xf32>
    %cst_19 = arith.constant dense<0.000000e+00> : vector<8xf32>
    %57 = vector.multi_reduction <add>, %56, %cst_19 [1] : vector<8x128xf32> to vector<8xf32>
    %58 = vector.shape_cast %57 : vector<8xf32> to vector<8x1xf32>
    %59 = math.log %58 : vector<8x1xf32>
    %60 = vector.broadcast %59 : vector<8x1xf32> to vector<8x128xf32>
    %61 = arith.subf %55, %60 : vector<8x128xf32>
    %62 = arith.truncf %61 : vector<8x128xf32> to vector<8x128xbf16>
    %c0_20 = arith.constant 0 : index
    %c0_21 = arith.constant 0 : index
    %63 = vector.load %arg8[%c0_20, %c0_21] : memref<8x128xbf16, #tpu.memory_space<vmem>>, vector<8x128xbf16>
    tpu.vector_store %arg8[%c0_20, %c0_21], %62 {strides = array<i32>} : memref<8x128xbf16, #tpu.memory_space<vmem>>, vector<8x128xbf16>,
    return
  }
  func.func @transform_0(%arg0: i32) -> (i32, i32) {
    %c0_i32 = arith.constant 0 : i32
    %c0_i32_0 = arith.constant 0 : i32
    return %arg0, %c0_i32 : i32, i32
  }
  func.func @transform_1(%arg0: i32) -> (i32, i32) {
    %c0_i32 = arith.constant 0 : i32
    %c0_i32_0 = arith.constant 0 : i32
    %c0_i32_1 = arith.constant 0 : i32
    return %c0_i32, %c0_i32_0 : i32, i32
  }
  func.func @transform_2(%arg0: i32) -> (i32, i32) {
    %c0_i32 = arith.constant 0 : i32
    %c0_i32_0 = arith.constant 0 : i32
    %c0_i32_1 = arith.constant 0 : i32
    return %c0_i32, %c0_i32_0 : i32, i32
  }
  func.func @transform_3(%arg0: i32) -> (i32, i32) {
    %c0_i32 = arith.constant 0 : i32
    %c0_i32_0 = arith.constant 0 : i32
    %c0_i32_1 = arith.constant 0 : i32
    return %c0_i32, %c0_i32_0 : i32, i32
  }
  func.func @transform_4(%arg0: i32) -> (i32, i32) {
    %c0_i32 = arith.constant 0 : i32
    %c0_i32_0 = arith.constant 0 : i32
    %c0_i32_1 = arith.constant 0 : i32
    return %c0_i32, %c0_i32_0 : i32, i32
  }
  func.func @transform_5(%arg0: i32) -> (i32, i32) {
    %c0_i32 = arith.constant 0 : i32
    %c0_i32_0 = arith.constant 0 : i32
    %c0_i32_1 = arith.constant 0 : i32
    return %c0_i32, %c0_i32_0 : i32, i32
  }
  func.func @transform_6(%arg0: i32) -> (i32, i32) {
    %c0_i32 = arith.constant 0 : i32
    %c0_i32_0 = arith.constant 0 : i32
    %c0_i32_1 = arith.constant 0 : i32
    return %c0_i32, %c0_i32_0 : i32, i32
  }
  func.func @transform_7(%arg0: i32) -> (i32, i32) {
    %c0_i32 = arith.constant 0 : i32
    %c0_i32_0 = arith.constant 0 : i32
    return %arg0, %c0_i32 : i32, i32
  }
}

</mosaic_0001>

<bundles_post_ra>
// kernel: cat_obs_actor_forward.1
= control target key start
LH: loop header
LB: loop body
LE: loop exit
PB: predicated region body
PF: predicated region fallthrough
CT: control target
= control target key end

     0   :  { %v608_v2 = vmov 0   ;;  %v609_v3 = vmov 2   ;;  %v610_v4 = vmov 0.0   ;;  %v611_v6 = vmov 1   ;;  %s785_s0 = inlined_call_operand.vmem [shape: s32[8,4], index: 0, kind: input, shape index: {}]   ;;  %s786_s1 = inlined_call_operand.vmem [shape: bf16[128,128], index: 1, kind: input, shape index: {}]   ;;  %s787_s2 = inlined_call_operand.vmem [shape: f32[1,128], index: 2, kind: input, shape index: {}]   ;;  %s788_s3 = inlined_call_operand.vmem [shape: bf16[128,128], index: 3, kind: input, shape index: {}]   ;;  %s789_s4 = inlined_call_operand.vmem [shape: f32[1,128], index: 4, kind: input, shape index: {}]   ;;  %s790_s5 = inlined_call_operand.vmem [shape: bf16[128,128], index: 5, kind: input, shape index: {}]   ;;  %s791_s6 = inlined_call_operand.vmem [shape: f32[1,128], index: 6, kind: input, shape index: {}]   ;;  %s792_s7 = inlined_call_operand.hbm [shape: bf16[8,128], index: 7, kind: output, shape index: {}]  }
   0x1   :  { %v28_v0 = vld [vmem:[%s785_s0] sm:$0xff]  ;;  %551 = vset.pattern.permute.xlu0 %v608_v2  ;;  %553 = vset.pattern.permute.xlu1 %v609_v3  ;;  %v557_v5 = vld [vmem:[%s786_s1 + $0x8] sm:$0xff]   ;;  %v612_v7 = vmov 3   ;;  %v558_v8 = vld [vmem:[%s786_s1 + $0x10] sm:$0xff]   ;;  %vm613_vm0 = vmmov 0  }
   0x2   :  { %v556_v1 = vld [vmem:[%s786_s1] sm:$0xff]   ;;  %32 = vperm.xlu0 %551, %v28_v0   ;;  %48 = vperm.xlu1 %553, %v28_v0   ;;  %v559_v9 = vld [vmem:[%s786_s1 + $0x18] sm:$0xff]   ;;  %v561_v12 = vld [vmem:[%s786_s1 + $0x28] sm:$0xff]  }
   0x3   :  { %484 = vmatprep.subr.bf16.mxu0 %v610_v4  ;;  %504 = vmatprep.subr.bf16.mxu1 %v610_v4  ;;  %v560_v10 = vld [vmem:[%s786_s1 + $0x20] sm:$0xff]   ;;  %v565_v13 = vld [vmem:[%s788_s3 + $0x8] sm:$0xff]  }
   0x4   :  { %485 = vmatpush3.bf16.msra.mxu0 %v556_v1  ;;  %500 = vmatprep.mubr.msk.bf16.mxu0 %vm613_vm0, %v610_v4  ;;  %v564_v11 = vld [vmem:[%s788_s3] sm:$0xff]  }
   0x5   :  { %486 = vmatprep.subr.bf16.mxu0 %v610_v4  ;;  %520 = vmatprep.mubr.msk.bf16.mxu1 %vm613_vm0, %v610_v4 }
   0x6   :  { %552 = vset.pattern.permute.xlu0 %v611_v6  ;;  %554 = vset.pattern.permute.xlu1 %v612_v7 }
   0x7   :  { %40 = vperm.xlu0 %552, %v28_v0   ;;  %56 = vperm.xlu1 %554, %v28_v0  }
   0x8   :  { %487 = vmatpush3.bf16.msra.mxu0 %v557_v5  ;;  %505 = vmatpush3.bf16.msra.mxu1 %v564_v11 }
   0x9   :  { %488 = vmatprep.subr.bf16.mxu0 %v610_v4  ;;  %506 = vmatprep.subr.bf16.mxu1 %v610_v4 }
   0xb   :  { %555 = vset.pattern.permute.xlu0 %v612_v7 }
   0xc   :  { %489 = vmatpush3.bf16.msra.mxu0 %v558_v8 }
   0xd   :  { %490 = vmatprep.subr.bf16.mxu0 %v610_v4 }
  0x10   :  { %491 = vmatpush3.bf16.msra.mxu0 %v559_v9 }
  0x11   :  { %492 = vmatprep.subr.bf16.mxu0 %v610_v4 }
  0x14   :  { %493 = vmatpush3.bf16.msra.mxu0 %v560_v10 }
  0x15   :  { %494 = vmatprep.subr.bf16.mxu0 %v610_v4 }
  0x16   :  { %12 = vsyncpa [#allocation3], 0  ;;  %507 = vmatpush3.bf16.msra.mxu1 %v565_v13  ;;  %v566_v14 = vld [vmem:[%s788_s3 + $0x10] sm:$0xff]   ;;  %v567_v16 = vld [vmem:[%s788_s3 + $0x18] sm:$0xff]   ;;  %v29_v20 = vlaneseq }
  0x17   :  { %v562_v15 = vld [vmem:[%s786_s1 + $0x30] sm:$0xff]   ;;  %508 = vmatprep.subr.bf16.mxu1 %v610_v4  ;;  %v563_v17 = vld [vmem:[%s786_s1 + $0x38] sm:$0xff]   ;;  %v568_v18 = vld [vmem:[%s788_s3 + $0x20] sm:$0xff]  }
  0x18   :  { %495 = vmatpush3.bf16.msra.mxu0 %v561_v12  ;;  %v569_v19 = vld [vmem:[%s788_s3 + $0x28] sm:$0xff]   ;;  %v30_v21 = vand.u32 127, %v29_v20  ;;  %v570_v38 = vld [vmem:[%s788_s3 + $0x30] sm:$0xff]   ;;  %v571_v39 = vld [vmem:[%s788_s3 + $0x38] sm:$0xff]  }
  0x19   :  { %496 = vmatprep.subr.bf16.mxu0 %v610_v4  ;;  %v572_v40 = vld [vmem:[%s790_s5] sm:$0xff]   ;;  %v573_v41 = vld [vmem:[%s790_s5 + $0x8] sm:$0xff]   ;;  %v574_v42 = vld [vmem:[%s790_s5 + $0x10] sm:$0xff]  }
  0x1a   :  { %509 = vmatpush3.bf16.msra.mxu1 %v566_v14  ;;  %v575_v43 = vld [vmem:[%s790_s5 + $0x18] sm:$0xff]   ;;  %v576_v44 = vld [vmem:[%s790_s5 + $0x20] sm:$0xff]   ;;  %v577_v45 = vld [vmem:[%s790_s5 + $0x28] sm:$0xff]  }
  0x1b   :  { %510 = vmatprep.subr.bf16.mxu1 %v610_v4  ;;  %v430_v46 = vld [vmem:[%s787_s2] ss:$0 sm:$0xff]  ;;  %v578_v54 = vld [vmem:[%s790_s5 + $0x30] sm:$0xff]   ;;  %v579_v55 = vld [vmem:[%s790_s5 + $0x38] sm:$0xff]  }
  0x1c   :  { %497 = vmatpush3.bf16.msra.mxu0 %v562_v15  ;;  %v439_v56 = vld [vmem:[%s789_s4] ss:$0 sm:$0xff]  ;;  %s614_s4 = smov [#allocation2]  }
  0x1d   :  { %498 = vmatprep.subr.bf16.mxu0 %v610_v4  ;;  %v448_v0 = vld [vmem:[%s791_s6] ss:$0 sm:$0xff]  ;;  %s418_s5 = sshll.u32 %s614_s4, 4  ;;  %s419_s5 = int_to_ptr.vmem [resolvable:$true] %s418_s5 }
  0x1e   :  { %511 = vmatpush3.bf16.msra.mxu1 %v567_v16  ;;  %s584_s6 = scalar_lea.vmem %s419_s5, 64  ;;  %p589_p1 = scmp.lt.s32.totalorder %s419_s5, %s419_s5 }
  0x1f   :  { %512 = vmatprep.subr.bf16.mxu1 %v610_v4  ;;  %p585_p0 = scmp.ne.s32.totalorder %s419_s5, %s584_s6  ;;  %p590_p2 = scmp.lt.s32.totalorder %s584_s6, %s584_s6 }
  0x20   :  { %499 = vmatpush3.bf16.msra.mxu0 %v563_v17 }
  0x21   :  { %524 = vmatprep.subr.bf16.mxu0 %v610_v4  ;;  %p591_p3 = por %p590_p2, %p589_p1 }
  0x22   :  { %513 = vmatpush3.bf16.msra.mxu1 %v568_v18 }
  0x23   :  { %514 = vmatprep.subr.bf16.mxu1 %v610_v4  ;;  %p592_p4 = pnand %p591_p3, %p585_p0 }
  0x26   :  { %515 = vmatpush3.bf16.msra.mxu1 %v569_v19 }
  0x27   :  { %516 = vmatprep.subr.bf16.mxu1 %v610_v4 }
  0x2a   :  { %517 = vmatpush3.bf16.msra.mxu1 %v570_v38 }
  0x2b   :  { %518 = vmatprep.subr.bf16.mxu1 %v610_v4 }
  0x2e   :  { %519 = vmatpush3.bf16.msra.mxu1 %v571_v39 }
  0x81   :  { %v33_v22 = vpop.permute.xlu0 %32  ;;  %v49_v23 = vpop.permute.xlu1 %48 }
  0x82   :  { %vm34_vm1 = vcmp.eq.s32.totalorder %v33_v22, %v30_v21  ;;  %vm50_vm2 = vcmp.eq.s32.totalorder %v49_v23, %v30_v21 }
  0x83   :  { %v426_v24 = vsel %vm34_vm1, 1.0, %v610_v4  ;;  %v428_v28 = vsel %vm50_vm2, 1.0, %v610_v4 }
  0x84   :  { %v37_v25 = vpack.c.bf16 %v426_v24, %v426_v24  ;;  %v53_v33 = vpack.c.bf16 %v428_v28, %v428_v28 }
  0x86   :  { %v41_v26 = vpop.permute.xlu0 %40  ;;  %v57_v27 = vpop.permute.xlu1 %56  ;;  %v38_v31 = vadd.bf16 0, %v37_v25 }
  0x87   :  { %vm42_vm3 = vcmp.eq.s32.totalorder %v41_v26, %v30_v21  ;;  %vm58_vm4 = vcmp.eq.s32.totalorder %v57_v27, %v30_v21 }
  0x88   :  { %v427_v29 = vsel %vm42_vm3, 1.0, %v610_v4  ;;  %v429_v30 = vsel %vm58_vm4, 1.0, %v610_v4 }
  0x89   :  { %v45_v32 = vpack.c.bf16 %v427_v29, %v427_v29  ;;  %v61_v35 = vpack.c.bf16 %v429_v30, %v429_v30 }
  0x8b   :  { %v46_v34 = vadd.bf16 %v45_v32, %v38_v31 }
  0x8d   :  { %v54_v36 = vadd.bf16 %v53_v33, %v46_v34 }
  0x8f   :  { %v62_v37 = vadd.bf16 %v61_v35, %v54_v36 }
  0x91   :  { %501 = vmatmul.mubr.bf16.vlgmr.msra.gmra.mrb[0].mxu0 %v62_v37 }
  0x92   :  { %540 = vmatprep.mubr.msk.bf16.mxu0 %vm613_vm0, %v610_v4  ;;  %525 = vmatpush3.bf16.msra.mxu0 %v572_v40 }
  0x93   :  { %526 = vmatprep.subr.bf16.mxu0 %v610_v4 }
  0x96   :  { %527 = vmatpush3.bf16.msra.mxu0 %v573_v41 }
  0x97   :  { %528 = vmatprep.subr.bf16.mxu0 %v610_v4 }
  0x9a   :  { %529 = vmatpush3.bf16.msra.mxu0 %v574_v42 }
  0x9b   :  { %530 = vmatprep.subr.bf16.mxu0 %v610_v4 }
  0x9e   :  { %531 = vmatpush3.bf16.msra.mxu0 %v575_v43 }
  0x9f   :  { %532 = vmatprep.subr.bf16.mxu0 %v610_v4 }
  0xa2   :  { %533 = vmatpush3.bf16.msra.mxu0 %v576_v44 }
  0xa3   :  { %534 = vmatprep.subr.bf16.mxu0 %v610_v4 }
  0xa6   :  { %535 = vmatpush3.bf16.msra.mxu0 %v577_v45 }
  0xa7   :  { %536 = vmatprep.subr.bf16.mxu0 %v610_v4 }
  0xaa   :  { %537 = vmatpush3.bf16.msra.mxu0 %v578_v54 }
  0xab   :  { %538 = vmatprep.subr.bf16.mxu0 %v610_v4 }
  0xae   :  { %539 = vmatpush3.bf16.msra.mxu0 %v579_v55 }
 0x164   :  { %v168_v47 = vpop.f32.mrb[0].mxu0 }
 0x165   :  { %v169_v48 = vadd.f32 %v430_v46, %v168_v47  ;;  %v502_v49 = vpop.f32.mrb[1].mxu0 }
 0x166   :  { %v171_v50 = vpop.f32.mrb[2].mxu0 }
 0x167   :  { %v174_v51 = vmax.f32 %v169_v48, 0.0  ;;  %v503_v52 = vpop.f32.mrb[3].mxu0 }
 0x169   :  { %v175_v53 = vpack.c.bf16 %v174_v51, %v174_v51 }
 0x16b   :  { %521 = vmatmul.mubr.bf16.vlgmr.msra.gmra.mrb[0].mxu1 %v175_v53 }
 0x23e   :  { %v281_v57 = vpop.f32.mrb[0].mxu1 }
 0x23f   :  { %v282_v58 = vadd.f32 %v439_v56, %v281_v57  ;;  %v522_v59 = vpop.f32.mrb[1].mxu1 }
 0x240   :  { %v284_v60 = vpop.f32.mrb[2].mxu1 }
 0x241   :  { %v287_v61 = vmax.f32 %v282_v58, 0.0  ;;  %v523_v62 = vpop.f32.mrb[3].mxu1 }
 0x243   :  { %v288_v63 = vpack.c.bf16 %v287_v61, %v287_v61 }
 0x245   :  { %541 = vmatmul.mubr.bf16.vlgmr.msra.gmra.mrb[4].mxu0 %v288_v63 }
 0x318   :  { %v394_v1 = vpop.f32.mrb[4].mxu0 }
 0x319   :  { %v395_v2 = vadd.f32 %v448_v0, %v394_v1  ;;  %v542_v3 = vpop.f32.mrb[5].mxu0 }
 0x31a   :  { %v397_v4 = vpop.f32.mrb[6].mxu0 }
 0x31b   :  { %400 = vmax.xlane.f32.xlu1 %v395_v2  ;;  %v543_v5 = vpop.f32.mrb[7].mxu0 }
 0x3a8   :  { %v401_v6 = vpop.xlane.xlu1 %400 }
 0x3a9   :  { %v402_v7 = vsub.f32 %v395_v2, %v401_v6 }
 0x3ab   :  { %v403_v8 = vmul.f32 1.442695, %v402_v7 }
 0x3ad   :  { %580 = vpow2.f32 %v403_v8 }
 0x3b7   :  { %v581_v9 = vpop.eup %580 }
 0x3b8   :  { %405 = vadd.xlane.f32.xlu0 %v581_v9 }
 0x445   :  { %v406_v10 = vpop.xlane.xlu0 %405 }
 0x446   :  { %582 = vlog2.f32 %v406_v10 }
 0x450   :  { %v583_v11 = vpop.eup %582 }
 0x451   :  { %v408_v12 = vmul.f32 0.6931472, %v583_v11 }
 0x453   :  { %v409_v13 = vsub.f32 %v402_v7, %v408_v12 }
 0x455   :  { %v410_v14 = vpack.c.bf16 %v409_v13, %v409_v13 }
 0x457   :  { %411 = vst [vmem:[#allocation2] sm:$0xf] %v410_v14 }
 0x458   :  { %595 = shalt.err (!%p592_p4)
}
 0x459   :  { %s596_s0 = scalar_lea.hbm %s792_s7, 64 }
 0x45a   :  { %p597_p5 = scmp.ne.s32.totalorder %s792_s7, %s596_s0  ;;  %p600_p6 = scmp.lt.u32.totalorder %s596_s0, %s792_s7 }
 0x45c   :  { %p602_p7 = pnand %p600_p6, %p597_p5 }
 0x45e   :  { %605 = shalt.err (!%p602_p7)
}
 0x45f   :  { %421 = dma.vmem_to_hbm [thread:$0]  %s419_s5, 64, %s792_s7, [#allocation3]  }
 0x460   :  { %606 = dma.done.wait [#allocation3], 64  }
 0x461   :  { %607 = vsyncadd [#allocation3], 4294967232 }
 0x462   :  { %425 = vsyncpa [#allocation3], 1 }

</bundles_post_ra>
